<compile_context>
chip_gen: v7x
topology: tpu7x:2x2x1
jax: 0.10.0
libtpu: 0.0.40
codegen_flags: <defaults>
</compile_context>

<pallas_src>
import math

import jax
import jax.numpy as jnp
from jax.experimental import pallas as pl
from jax.experimental.pallas import tpu as pltpu

_SUBLANE = 8


def _indexes1x_kernel(x_ref, w_ref, idx_ref, o_ref):
    # x/w/o tiles: (TM, S); idx tile: (1, S) -> broadcasts along sublanes (VPU).
    out = x_ref[...] * w_ref[...] * idx_ref[...] + 1e-08
    o_ref[...] = out.astype(o_ref.dtype)


def _round_up(n, m):
    return ((n + m - 1) // m) * m


def _choose_row_block(num_rows, num_cols, itemsize, block_bytes):
    """Rows per block: multiple of 8, ~block_bytes per buffer, capped at rows."""
    rows = (block_bytes // max(1, num_cols * itemsize)) // _SUBLANE * _SUBLANE
    rows = max(_SUBLANE, rows)
    rows = min(rows, _round_up(num_rows, _SUBLANE))
    return int(rows)


def indexes1x_forward(x, weight, index_tensor, *, block_bytes=2 * 1024 * 1024):
    """x broadcastable to weight; weight: (Cin, Cout, *shape); index: (1,1,*shape)."""
    cin, cout = int(weight.shape[0]), int(weight.shape[1])
    spatial = tuple(int(s) for s in weight.shape[2:])
    S = math.prod(spatial)
    R = cin * cout

    x = jnp.broadcast_to(x, weight.shape)

    # Lane-dense flattened views.
    x2 = x.reshape(R, S)
    w2 = weight.reshape(R, S)
    idx2 = index_tensor.reshape(1, S)

    itemsize = jnp.dtype(x.dtype).itemsize
    tm = _choose_row_block(R, S, itemsize, block_bytes)
    grid_m = pl.cdiv(R, tm)
    Rp = grid_m * tm
    if Rp != R:
        pad = Rp - R
        x2 = jnp.pad(x2, ((0, pad), (0, 0)))
        w2 = jnp.pad(w2, ((0, pad), (0, 0)))

    out2 = pl.pallas_call(
        _indexes1x_kernel,
        out_shape=jax.ShapeDtypeStruct((Rp, S), x.dtype),
        grid_spec=pltpu.PrefetchScalarGridSpec(
            num_scalar_prefetch=0,
            grid=(grid_m,),
            in_specs=[
                pl.BlockSpec((tm, S), lambda i: (i, 0)),   # x rows
                pl.BlockSpec((tm, S), lambda i: (i, 0)),   # weight rows
                pl.BlockSpec((1, S), lambda i: (0, 0)),    # index row (constant block)
            ],
            out_specs=pl.BlockSpec((tm, S), lambda i: (i, 0)),
        ),
        compiler_params=pltpu.CompilerParams(
            # Single parallel axis -> megacore sharding on v7x; ~2 MiB buffers
            # double-buffered stay under the default scoped-VMEM limit on all
            # generations, so no vmem_limit_bytes override is needed.
            dimension_semantics=("parallel",),
        ),
    )(x2, w2, idx2)

    return out2[:R].reshape((cin, cout) + spatial)


def make_index_tensor(shape, axis=0, dtype=jnp.float32):
    """Replicates Indexes1x.generate_tensor: arange(1..shape[axis]) along `axis`,
    broadcast over remaining dims, with two leading unit dims."""
    shape = tuple(shape)
    idx = jnp.arange(1, shape[axis] + 1, dtype=dtype)
    bshape = [1] * len(shape)
    bshape[axis] = shape[axis]
    idx = idx.reshape(bshape) * jnp.ones(shape, dtype=dtype)
    return idx.reshape((1, 1) + shape)


def init_params(key, in_channels, out_channels, shape, dtype=jnp.float32):
    """Deterministic stand-in for kaiming_uniform_(a=sqrt(5)) + bias uniform."""
    kw, kb = jax.random.split(key)
    # PyTorch fan_in for a (Cin, Cout, *shape) tensor = Cout * prod(shape)
    fan_in = out_channels * math.prod(shape)
    gain = math.sqrt(2.0 / (1.0 + 5.0))  # a = sqrt(5)
    w_bound = gain * math.sqrt(3.0 / fan_in)
    weight = jax.random.uniform(
        kw, (in_channels, out_channels) + tuple(shape),
        minval=-w_bound, maxval=w_bound, dtype=dtype)
    b_bound = 1.0 / math.sqrt(fan_in)
    bias = jax.random.uniform(
        kb, (out_channels,), minval=-b_bound, maxval=b_bound, dtype=dtype)
    # NOTE: bias is created by the PyTorch module but never used in forward().
    return weight, bias


if __name__ == "__main__":
    in_channels, out_channels = 2, 4
    shape = (16, 16)
    axis = 0

    key = jax.random.PRNGKey(0)
    k_x, k_p = jax.random.split(key)

    weight, bias = init_params(k_p, in_channels, out_channels, shape)
    index_tensor = make_index_tensor(shape, axis=axis)

    # Input broadcasts against weight; demo uses the full weight shape.
    x = jax.random.normal(
        k_x, (in_channels, out_channels) + shape, dtype=jnp.float32)

    out = indexes1x_forward(x, weight, index_tensor)
    out = jax.block_until_ready(out)

    # Reference check in plain JAX (same math as the PyTorch forward).
    ref = x * weight * index_tensor + 1e-08
    assert out.shape == (in_channels, out_channels) + shape
    assert jnp.allclose(out, ref, atol=1e-6, rtol=1e-6)

    print("KERNEL_OK")
</pallas_src>

<mosaic_0001>
module attributes {stable_mosaic.version = 11 : i64} {
  func.func @_indexes1x_kernel(%arg0: i32, %arg1: memref<8x256xf32, #tpu.memory_space<vmem>>, %arg2: memref<8x256xf32, #tpu.memory_space<vmem>>, %arg3: memref<1x256xf32, #tpu.memory_space<vmem>>, %arg4: memref<8x256xf32, #tpu.memory_space<vmem>>) attributes {dimension_semantics = [#tpu.dimension_semantics<parallel>], iteration_bounds = array<i64: 1>, scalar_prefetch = 0 : i64, scratch_operands = 0 : i64, tpu.core_type = #tpu.core_type<tc>, window_params = [{transform_indices = @transform_0, window_bounds = array<i64: 8, 256>}, {transform_indices = @transform_1, window_bounds = array<i64: 8, 256>}, {pipeline_mode = #tpu.pipeline_mode<synchronous>, transform_indices = @transform_2, window_bounds = array<i64: 1, 256>}, {transform_indices = @transform_3, window_bounds = array<i64: 8, 256>}]} {
    %c0 = arith.constant 0 : index
    %c0_0 = arith.constant 0 : index
    %0 = vector.load %arg1[%c0, %c0_0] : memref<8x256xf32, #tpu.memory_space<vmem>>, vector<8x256xf32>
    %c0_1 = arith.constant 0 : index
    %c0_2 = arith.constant 0 : index
    %1 = vector.load %arg2[%c0_1, %c0_2] : memref<8x256xf32, #tpu.memory_space<vmem>>, vector<8x256xf32>
    %2 = arith.mulf %0, %1 : vector<8x256xf32>
    %c0_3 = arith.constant 0 : index
    %c0_4 = arith.constant 0 : index
    %3 = vector.load %arg3[%c0_3, %c0_4] : memref<1x256xf32, #tpu.memory_space<vmem>>, vector<1x256xf32>
    %4 = vector.broadcast %3 : vector<1x256xf32> to vector<8x256xf32>
    %5 = arith.mulf %2, %4 : vector<8x256xf32>
    %cst = arith.constant 9.99999993E-9 : f32
    %6 = vector.broadcast %cst : f32 to vector<8x256xf32>
    %7 = arith.addf %5, %6 : vector<8x256xf32>
    %c0_5 = arith.constant 0 : index
    %c0_6 = arith.constant 0 : index
    %8 = vector.load %arg4[%c0_5, %c0_6] : memref<8x256xf32, #tpu.memory_space<vmem>>, vector<8x256xf32>
    tpu.vector_store %arg4[%c0_5, %c0_6], %7 {strides = array<i32>} : memref<8x256xf32, #tpu.memory_space<vmem>>, vector<8x256xf32>,
    return
  }
  func.func @transform_0(%arg0: i32) -> (i32, i32) {
    %c0_i32 = arith.constant 0 : i32
    %c0_i32_0 = arith.constant 0 : i32
    return %arg0, %c0_i32 : i32, i32
  }
  func.func @transform_1(%arg0: i32) -> (i32, i32) {
    %c0_i32 = arith.constant 0 : i32
    %c0_i32_0 = arith.constant 0 : i32
    return %arg0, %c0_i32 : i32, i32
  }
  func.func @transform_2(%arg0: i32) -> (i32, i32) {
    %c0_i32 = arith.constant 0 : i32
    %c0_i32_0 = arith.constant 0 : i32
    %c0_i32_1 = arith.constant 0 : i32
    return %c0_i32, %c0_i32_0 : i32, i32
  }
  func.func @transform_3(%arg0: i32) -> (i32, i32) {
    %c0_i32 = arith.constant 0 : i32
    %c0_i32_0 = arith.constant 0 : i32
    return %arg0, %c0_i32 : i32, i32
  }
}

</mosaic_0001>

<bundles_post_ra>
// kernel: tpu_custom_call.1
= control target key start
LH: loop header
LB: loop body
LE: loop exit
PB: predicated region body
PF: predicated region fallthrough
CT: control target
= control target key end

     0   :  { %8 = vsyncpa [#allocation3], 0  ;;  %s216_s0 = inlined_call_operand.hbm [shape: f32[8,256], index: 0, kind: input, shape index: {}]   ;;  %s217_s1 = inlined_call_operand.hbm [shape: f32[8,256], index: 1, kind: input, shape index: {}]   ;;  %s218_s2 = inlined_call_operand.vmem [shape: f32[1,256], index: 2, kind: input, shape index: {}]   ;;  %s219_s3 = inlined_call_operand.hbm [shape: f32[8,256], index: 3, kind: output, shape index: {}]  }
   0x1   :  { %9 = vsyncpa [#allocation6], 0 }
   0x2   :  { %10 = vsyncpa [#allocation4], 0  ;;  %s154_s12 = smov [#allocation2]   ;;  %s155_s14 = smov [#allocation5]  }
   0x3   :  { %s17_s13 = sshll.u32 %s154_s12, 4  ;;  %s27_s15 = sshll.u32 %s155_s14, 4  ;;  %s18_s13 = int_to_ptr.vmem [resolvable:$true] %s17_s13  ;;  %s28_s15 = int_to_ptr.vmem [resolvable:$true] %s27_s15 }
   0x4   :  { %s82_s18 = scalar_lea.hbm %s216_s0, 256 }
   0x5   :  { %p83_p0 = scmp.ne.s32.totalorder %s216_s0, %s82_s18  ;;  %p86_p1 = scmp.lt.u32.totalorder %s82_s18, %s216_s0 }
   0x7   :  { %p88_p2 = pnand %p86_p1, %p83_p0 }
   0x9   :  { %91 = shalt.err (!%p88_p2)
}
   0xa   :  { %s92_s23 = scalar_lea.vmem %s18_s13, 256  ;;  %p97_p4 = scmp.lt.s32.totalorder %s18_s13, %s18_s13 }
   0xb   :  { %p93_p3 = scmp.ne.s32.totalorder %s18_s13, %s92_s23  ;;  %p98_p5 = scmp.lt.s32.totalorder %s92_s23, %s92_s23 }
   0xd   :  { %p99_p6 = por %p98_p5, %p97_p4 }
   0xf   :  { %p100_p7 = pnand %p99_p6, %p93_p3 }
  0x11   :  { %103 = shalt.err (!%p100_p7)
}
  0x12   :  { %20 = dma.hbm_to_vmem [thread:$0]  %s216_s0, 256, %s18_s13, [#allocation3]  }
  0x13   :  { %s104_s28 = scalar_lea.hbm %s217_s1, 256 }
  0x14   :  { %p105_p8 = scmp.ne.s32.totalorder %s217_s1, %s104_s28  ;;  %p108_p9 = scmp.lt.u32.totalorder %s104_s28, %s217_s1 }
  0x16   :  { %p110_p10 = pnand %p108_p9, %p105_p8 }
  0x18   :  { %113 = shalt.err (!%p110_p10)
}
  0x19   :  { %s114_s6 = scalar_lea.vmem %s28_s15, 256  ;;  %p119_p12 = scmp.lt.s32.totalorder %s28_s15, %s28_s15 }
  0x1a   :  { %p115_p11 = scmp.ne.s32.totalorder %s28_s15, %s114_s6  ;;  %p120_p13 = scmp.lt.s32.totalorder %s114_s6, %s114_s6 }
  0x1c   :  { %p121_p0 = por %p120_p13, %p119_p12 }
  0x1e   :  { %p122_p1 = pnand %p121_p0, %p115_p11 }
  0x20   :  { %125 = shalt.err (!%p122_p1)
}
  0x21   :  { %30 = dma.hbm_to_vmem [thread:$0]  %s217_s1, 256, %s28_s15, [#allocation6]  }
  0x22   :  { %148 = dma.done.wait [#allocation3], 256  }
  0x23   :  { %149 = vsyncadd [#allocation3], 4294967040 }
  0x24   :  { %150 = dma.done.wait [#allocation6], 256  }
  0x25   :  { %151 = vsyncadd [#allocation6], 4294967040  ;;  %v47_v0 = vlaneseq  ;;  %v39_v4 = vld [vmem:[#allocation2] sm:$0xff]  ;;  %v41_v5 = vld [vmem:[#allocation5] sm:$0xff]  ;;  %s156_s1 = smov [#allocation7]  }
  0x26   :  { %v45_v6 = vld [vmem:[%s218_s2] sm:$0x3]  ;;  %v43_v7 = vmul.f32 %v41_v5, %v39_v4  ;;  %v40_v9 = vld [vmem:[#allocation2 + $0x8] sm:$0xff]  ;;  %v42_v10 = vld [vmem:[#allocation5 + $0x8] sm:$0xff]  ;;  %s69_s10 = sshll.u32 %s156_s1, 4  ;;  %s70_s10 = int_to_ptr.vmem [resolvable:$true] %s69_s10 }
  0x27   :  { %v48_v1 = vshrl.u32 %v47_v0, 7  ;;  %v44_v12 = vmul.f32 %v42_v10, %v40_v9  ;;  %s126_s11 = scalar_lea.vmem %s70_s10, 256  ;;  %p131_p3 = scmp.lt.s32.totalorder %s70_s10, %s70_s10 }
  0x28   :  { %p127_p2 = scmp.ne.s32.totalorder %s70_s10, %s126_s11  ;;  %p132_p4 = scmp.lt.s32.totalorder %s126_s11, %s126_s11 }
  0x29   :  { %v49_v2 = vsub.s32 0, %v48_v1  ;;  %v53_v3 = vsub.s32 1, %v48_v1 }
  0x2a   :  { %p133_p5 = por %p132_p4, %p131_p3 }
  0x2b   :  { %v50_v8 = vrot.slane %v45_v6, %v49_v2  ;;  %v54_v11 = vrot.slane %v45_v6, %v53_v3 }
  0x2c   :  { %p134_p6 = pnand %p133_p5, %p127_p2 }
  0x2d   :  { %v57_v13 = vmul.f32 %v50_v8, %v43_v7  ;;  %v58_v14 = vmul.f32 %v54_v11, %v44_v12 }
  0x2f   :  { %v59_v15 = vadd.f32 1e-08, %v57_v13  ;;  %v60_v16 = vadd.f32 1e-08, %v58_v14 }
  0x31   :  { %61 = vst [vmem:[#allocation7] sm:$0xff] %v59_v15  ;;  %62 = vst [vmem:[#allocation7 + $0x8] sm:$0xff] %v60_v16 }
  0x32   :  { %137 = shalt.err (!%p134_p6)
}
  0x33   :  { %s138_s13 = scalar_lea.hbm %s219_s3, 256 }
  0x34   :  { %p139_p7 = scmp.ne.s32.totalorder %s219_s3, %s138_s13  ;;  %p142_p8 = scmp.lt.u32.totalorder %s138_s13, %s219_s3 }
  0x36   :  { %p144_p9 = pnand %p142_p8, %p139_p7 }
  0x38   :  { %147 = shalt.err (!%p144_p9)
}
  0x39   :  { %72 = dma.vmem_to_hbm [thread:$0]  %s70_s10, 256, %s219_s3, [#allocation4]  }
  0x3a   :  { %152 = dma.done.wait [#allocation4], 256  }
  0x3b   :  { %153 = vsyncadd [#allocation4], 4294967040 }
  0x3c   :  { %76 = vsyncpa [#allocation3], 1 }
  0x3d   :  { %77 = vsyncpa [#allocation6], 1 }
  0x3e   :  { %78 = vsyncpa [#allocation4], 1 }

</bundles_post_ra>
